<compile_context>
chip_gen: v7x
topology: tpu7x:2x2x1
jax: 0.10.0
libtpu: 0.0.40
codegen_flags: <defaults>
</compile_context>

<pallas_src>
import jax
import jax.numpy as jnp
from jax.experimental import pallas as pl
from jax.experimental.pallas import tpu as pltpu

# Small, forward-consistent shapes.
B, S, H, C, V = 2, 8, 32, 14, 64      # batch, seq_len, hidden_size, num_classes, vocab
B_TILE = 8                            # sublane-full batch tile (rows per grid step)
C_PAD = 128                           # lane-dense logits width (C=14 zero-padded)


def bert_classifier_kernel(vl_ref, emb_ref, wp_ref, bp_ref, wc_ref, bc_ref, out_ref):
    # ---- gen_attention_mask: mask[b, s] = 1.0 if s < valid_length[b] else 0.0
    # Single broadcast compare against the (B_TILE, 1) int32 valid_length tile.
    vl = vl_ref[...]                                                    # (B_TILE, 1) int32
    pos = jax.lax.broadcasted_iota(jnp.int32, (B_TILE, S), 1)
    mask = (pos < vl).astype(jnp.float32)                               # (B_TILE, S)

    # Pooling denominator straight from valid_length (== max(sum(mask), 1)); no XLU reduce.
    denom = jnp.clip(vl.astype(jnp.float32), 1.0, float(S))             # (B_TILE, 1)

    # TODO(synk): the full pretrained BERT encoder (self.bert) is an external module and
    # is not re-implemented; a masked mean over (token + segment) embeddings stands in
    # for the encoder's pooled output, followed by BERT's pooler head (dense + tanh).
    emb = emb_ref[...]                                                  # (B_TILE, S, H)
    # TODO(synk): at realistic S (>=128), route this reduction through the MXU
    # (einsum 'bs,bsh->bh', bf16 operands on v6e/v7x) instead of VPU multiply + sum.
    pooled = jnp.sum(mask[:, :, None] * emb, axis=1) / denom            # (B_TILE, H)

    pooler = jnp.tanh(
        jnp.dot(pooled, wp_ref[...], preferred_element_type=jnp.float32)
        + bp_ref[...])                                                  # (B_TILE, H)

    # dropout(p=dr_rate): nn.Dropout is identity in eval mode -> deterministic no-op.

    # ---- classifier: nn.Linear(hidden_size, num_classes), zero-padded to C_PAD lanes so
    # this is a single full-width unmasked vector store.
    out_ref[...] = (
        jnp.dot(pooler, wc_ref[...], preferred_element_type=jnp.float32)
        + bc_ref[...])                                                  # (B_TILE, C_PAD)


def init_params(key):
    ks = jax.random.split(key, 4)
    scale = 0.02
    return {
        "tok_emb":  scale * jax.random.normal(ks[0], (V, H), jnp.float32),
        "seg_emb":  scale * jax.random.normal(ks[1], (2, H), jnp.float32),
        "pooler_w": scale * jax.random.normal(ks[2], (H, H), jnp.float32),  # (out, in)
        "pooler_b": jnp.zeros((H,), jnp.float32),
        "cls_w":    scale * jax.random.normal(ks[3], (C, H), jnp.float32),  # (out, in)
        "cls_b":    jnp.zeros((C,), jnp.float32),
    }


def prepare_params(params):
    """One-time parameter preparation (hoisted out of the per-call forward).

    Transposes weights to `x @ W` layout and zero-pads the classifier to C_PAD lanes so
    the kernel writes a single full (8, 128) slab with unmasked stores.  Do this once at
    model load; the per-forward cost of the transpose + scatter pads is pure overhead.
    """
    wp = jnp.asarray(params["pooler_w"].T)                              # (H, H)
    bp = params["pooler_b"].reshape(1, H)
    wc = jnp.zeros((H, C_PAD), jnp.float32).at[:, :C].set(params["cls_w"].T)
    bc = jnp.zeros((1, C_PAD), jnp.float32).at[:, :C].set(params["cls_b"])
    return {"tok_emb": params["tok_emb"], "seg_emb": params["seg_emb"],
            "wp": wp, "bp": bp, "wc": wc, "bc": bc}


def bert_classifier_forward(token_ids, valid_length, segment_ids, prep):
    # Glue (plain JAX): embedding gather + batch padding.  Mask / pooling / pooler /
    # classifier math stays in Pallas; weight prep is already done in prepare_params.
    b_in = token_ids.shape[0]
    pad_b = (-b_in) % B_TILE
    b_pad = b_in + pad_b

    tok_p = jnp.pad(token_ids, ((0, pad_b), (0, 0)))
    seg_p = jnp.pad(segment_ids, ((0, pad_b), (0, 0)))
    vl_p = jnp.pad(valid_length.astype(jnp.int32), (0, pad_b)).reshape(b_pad, 1)

    # TODO(synk): at real vocab/seq sizes, fuse this gather into the kernel
    # (scalar-prefetched ids + pl.Element row index_map) to avoid the HBM round trip.
    emb = (prep["tok_emb"][tok_p] + prep["seg_emb"][seg_p]).astype(jnp.float32)

    grid = (b_pad // B_TILE,)

    cost = pl.CostEstimate(
        flops=2 * b_pad * S * H + 2 * b_pad * H * H + 2 * b_pad * H * C_PAD,
        transcendentals=b_pad * H,
        bytes_accessed=4 * (b_pad * S * H + H * H + H * C_PAD
                            + b_pad * C_PAD + b_pad + 2 * H + C_PAD),
    )

    vmem = pltpu.MemorySpace.VMEM

    logits_pad = pl.pallas_call(
        bert_classifier_kernel,
        out_shape=jax.ShapeDtypeStruct((b_pad, C_PAD), jnp.float32),
        grid_spec=pltpu.PrefetchScalarGridSpec(
            num_scalar_prefetch=0,
            grid=grid,
            in_specs=[
                pl.BlockSpec((B_TILE, 1), lambda i: (i, 0), memory_space=vmem),      # valid_length
                pl.BlockSpec((B_TILE, S, H), lambda i: (i, 0, 0), memory_space=vmem),  # embeddings (batch-tiled)
                pl.BlockSpec((H, H), lambda i: (0, 0), memory_space=vmem),           # pooler weight (resident)
                pl.BlockSpec((1, H), lambda i: (0, 0), memory_space=vmem),           # pooler bias
                pl.BlockSpec((H, C_PAD), lambda i: (0, 0), memory_space=vmem),       # classifier weight (lane-padded)
                pl.BlockSpec((1, C_PAD), lambda i: (0, 0), memory_space=vmem),       # classifier bias
            ],
            out_specs=pl.BlockSpec((B_TILE, C_PAD), lambda i: (i, 0), memory_space=vmem),
        ),
        compiler_params=pltpu.CompilerParams(
            # Batch grid axis is parallel: shards across v7x's two TensorCores once
            # the batch spans more than one tile; no-op on v5e/v6e (1 TC).
            dimension_semantics=("parallel",)),
        cost_estimate=cost,
    )(vl_p, emb, prep["wp"], prep["bp"], prep["wc"], prep["bc"])

    return logits_pad[:b_in, :C]


def reference_forward(token_ids, valid_length, segment_ids, params):
    emb = params["tok_emb"][token_ids] + params["seg_emb"][segment_ids]
    pos = jnp.arange(S)[None, :]
    mask = (pos < valid_length[:, None]).astype(jnp.float32)
    pooled = jnp.sum(mask[:, :, None] * emb, axis=1) / jnp.maximum(
        jnp.sum(mask, axis=1, keepdims=True), 1.0)
    pooler = jnp.tanh(pooled @ params["pooler_w"].T + params["pooler_b"])
    return pooler @ params["cls_w"].T + params["cls_b"]


if __name__ == "__main__":
    key = jax.random.PRNGKey(0)
    k_tok, k_seg, k_par = jax.random.split(key, 3)

    token_ids = jax.random.randint(k_tok, (B, S), 0, V, dtype=jnp.int32)
    segment_ids = jax.random.randint(k_seg, (B, S), 0, 2, dtype=jnp.int32)
    valid_length = jnp.array([5, 8], dtype=jnp.int32)

    params = init_params(k_par)
    prep = prepare_params(params)      # one-time weight transpose / lane padding

    logits = bert_classifier_forward(token_ids, valid_length, segment_ids, prep)
    logits = jax.block_until_ready(logits)

    ref_logits = reference_forward(token_ids, valid_length, segment_ids, params)
    assert logits.shape == (B, C)
    assert jnp.allclose(logits, ref_logits, rtol=1e-5, atol=1e-5)

    print("KERNEL_OK")
</pallas_src>

<mosaic_0001>
module attributes {stable_mosaic.version = 11 : i64} {
  func.func @bert_classifier_kernel(%arg0: i32, %arg1: memref<8x1xi32, #tpu.memory_space<vmem>>, %arg2: memref<8x8x32xf32, #tpu.memory_space<vmem>>, %arg3: memref<32x32xf32, #tpu.memory_space<vmem>>, %arg4: memref<1x32xf32, #tpu.memory_space<vmem>>, %arg5: memref<32x128xf32, #tpu.memory_space<vmem>>, %arg6: memref<1x128xf32, #tpu.memory_space<vmem>>, %arg7: memref<8x128xf32, #tpu.memory_space<vmem>>) attributes {dimension_semantics = [#tpu.dimension_semantics<parallel>], iteration_bounds = array<i64: 1>, scalar_prefetch = 0 : i64, scratch_operands = 0 : i64, tpu.core_type = #tpu.core_type<tc>, window_params = [{transform_indices = @transform_0, window_bounds = array<i64: 8, 1>}, {transform_indices = @transform_1, window_bounds = array<i64: 8, 8, 32>}, {pipeline_mode = #tpu.pipeline_mode<synchronous>, transform_indices = @transform_2, window_bounds = array<i64: 32, 32>}, {pipeline_mode = #tpu.pipeline_mode<synchronous>, transform_indices = @transform_3, window_bounds = array<i64: 1, 32>}, {pipeline_mode = #tpu.pipeline_mode<synchronous>, transform_indices = @transform_4, window_bounds = array<i64: 32, 128>}, {pipeline_mode = #tpu.pipeline_mode<synchronous>, transform_indices = @transform_5, window_bounds = array<i64: 1, 128>}, {transform_indices = @transform_6, window_bounds = array<i64: 8, 128>}]} {
    %c0 = arith.constant 0 : index
    %c0_0 = arith.constant 0 : index
    %0 = vector.load %arg1[%c0, %c0_0] : memref<8x1xi32, #tpu.memory_space<vmem>>, vector<8x1xi32>
    %1 = tpu.iota {dimensions = array<i32: 1>} : vector<8x8xi32>
    %2 = vector.broadcast %0 : vector<8x1xi32> to vector<8x8xi32>
    %3 = arith.cmpi slt, %1, %2 : vector<8x8xi32>
    %4 = arith.extui %3 : vector<8x8xi1> to vector<8x8xi32>
    %5 = arith.sitofp %4 : vector<8x8xi32> to vector<8x8xf32>
    %6 = arith.sitofp %0 : vector<8x1xi32> to vector<8x1xf32>
    %cst = arith.constant 1.000000e+00 : f32
    %cst_1 = arith.constant 8.000000e+00 : f32
    %7 = vector.broadcast %cst : f32 to vector<8x1xf32>
    %8 = arith.maximumf %7, %6 : vector<8x1xf32>
    %9 = vector.broadcast %cst_1 : f32 to vector<8x1xf32>
    %10 = arith.minimumf %9, %8 : vector<8x1xf32>
    %c0_2 = arith.constant 0 : index
    %c0_3 = arith.constant 0 : index
    %c0_4 = arith.constant 0 : index
    %11 = vector.load %arg2[%c0_2, %c0_3, %c0_4] : memref<8x8x32xf32, #tpu.memory_space<vmem>>, vector<8x8x32xf32>
    %12 = vector.shape_cast %5 : vector<8x8xf32> to vector<8x8x1xf32>
    %13 = vector.broadcast %12 : vector<8x8x1xf32> to vector<8x8x32xf32>
    %14 = arith.mulf %13, %11 : vector<8x8x32xf32>
    %cst_5 = arith.constant dense<0.000000e+00> : vector<8x32xf32>
    %15 = vector.multi_reduction <add>, %14, %cst_5 [1] : vector<8x8x32xf32> to vector<8x32xf32>
    %16 = vector.broadcast %10 : vector<8x1xf32> to vector<8x32xf32>
    %17 = arith.divf %15, %16 : vector<8x32xf32>
    %c0_6 = arith.constant 0 : index
    %c0_7 = arith.constant 0 : index
    %18 = vector.load %arg3[%c0_6, %c0_7] : memref<32x32xf32, #tpu.memory_space<vmem>>, vector<32x32xf32>
    %cst_8 = arith.constant dense<0.000000e+00> : vector<8x32xf32>
    %19 = tpu.matmul %17, %18, %cst_8 {dimension_numbers = #tpu.dot_dimension_numbers<[1], [0], [0], [1], [0, 0, 1, 1], [], []>} : vector<8x32xf32>, vector<32x32xf32>, vector<8x32xf32> -> vector<8x32xf32>
    %c0_9 = arith.constant 0 : index
    %c0_10 = arith.constant 0 : index
    %20 = vector.load %arg4[%c0_9, %c0_10] : memref<1x32xf32, #tpu.memory_space<vmem>>, vector<1x32xf32>
    %21 = vector.broadcast %20 : vector<1x32xf32> to vector<8x32xf32>
    %22 = arith.addf %19, %21 : vector<8x32xf32>
    %23 = math.tanh %22 : vector<8x32xf32>
    %c0_11 = arith.constant 0 : index
    %c0_12 = arith.constant 0 : index
    %24 = vector.load %arg5[%c0_11, %c0_12] : memref<32x128xf32, #tpu.memory_space<vmem>>, vector<32x128xf32>
    %cst_13 = arith.constant dense<0.000000e+00> : vector<8x128xf32>
    %25 = tpu.matmul %23, %24, %cst_13 {dimension_numbers = #tpu.dot_dimension_numbers<[1], [0], [0], [1], [0, 0, 1, 1], [], []>} : vector<8x32xf32>, vector<32x128xf32>, vector<8x128xf32> -> vector<8x128xf32>
    %c0_14 = arith.constant 0 : index
    %c0_15 = arith.constant 0 : index
    %26 = vector.load %arg6[%c0_14, %c0_15] : memref<1x128xf32, #tpu.memory_space<vmem>>, vector<1x128xf32>
    %27 = vector.broadcast %26 : vector<1x128xf32> to vector<8x128xf32>
    %28 = arith.addf %25, %27 : vector<8x128xf32>
    %c0_16 = arith.constant 0 : index
    %c0_17 = arith.constant 0 : index
    %29 = vector.load %arg7[%c0_16, %c0_17] : memref<8x128xf32, #tpu.memory_space<vmem>>, vector<8x128xf32>
    tpu.vector_store %arg7[%c0_16, %c0_17], %28 {strides = array<i32>} : memref<8x128xf32, #tpu.memory_space<vmem>>, vector<8x128xf32>,
    return
  }
  func.func @transform_0(%arg0: i32) -> (i32, i32) {
    %c0_i32 = arith.constant 0 : i32
    %c0_i32_0 = arith.constant 0 : i32
    return %arg0, %c0_i32 : i32, i32
  }
  func.func @transform_1(%arg0: i32) -> (i32, i32, i32) {
    %c0_i32 = arith.constant 0 : i32
    %c0_i32_0 = arith.constant 0 : i32
    %c0_i32_1 = arith.constant 0 : i32
    return %arg0, %c0_i32, %c0_i32_0 : i32, i32, i32
  }
  func.func @transform_2(%arg0: i32) -> (i32, i32) {
    %c0_i32 = arith.constant 0 : i32
    %c0_i32_0 = arith.constant 0 : i32
    %c0_i32_1 = arith.constant 0 : i32
    return %c0_i32, %c0_i32_0 : i32, i32
  }
  func.func @transform_3(%arg0: i32) -> (i32, i32) {
    %c0_i32 = arith.constant 0 : i32
    %c0_i32_0 = arith.constant 0 : i32
    %c0_i32_1 = arith.constant 0 : i32
    return %c0_i32, %c0_i32_0 : i32, i32
  }
  func.func @transform_4(%arg0: i32) -> (i32, i32) {
    %c0_i32 = arith.constant 0 : i32
    %c0_i32_0 = arith.constant 0 : i32
    %c0_i32_1 = arith.constant 0 : i32
    return %c0_i32, %c0_i32_0 : i32, i32
  }
  func.func @transform_5(%arg0: i32) -> (i32, i32) {
    %c0_i32 = arith.constant 0 : i32
    %c0_i32_0 = arith.constant 0 : i32
    %c0_i32_1 = arith.constant 0 : i32
    return %c0_i32, %c0_i32_0 : i32, i32
  }
  func.func @transform_6(%arg0: i32) -> (i32, i32) {
    %c0_i32 = arith.constant 0 : i32
    %c0_i32_0 = arith.constant 0 : i32
    return %arg0, %c0_i32 : i32, i32
  }
}

</mosaic_0001>

<bundles_post_ra>
// kernel: tpu_custom_call.1
= control target key start
LH: loop header
LB: loop body
LE: loop exit
PB: predicated region body
PF: predicated region fallthrough
CT: control target
= control target key end

     0   :  { %11 = vsyncpa [#allocation3], 0  ;;  %s770_s0 = inlined_call_operand.vmem [shape: s32[8,1], index: 0, kind: input, shape index: {}]   ;;  %s771_s1 = inlined_call_operand.hbm [shape: f32[8,8,32], index: 1, kind: input, shape index: {}]   ;;  %s772_s2 = inlined_call_operand.hbm [shape: f32[32,32], index: 2, kind: input, shape index: {}]   ;;  %s773_s3 = inlined_call_operand.vmem [shape: f32[1,32], index: 3, kind: input, shape index: {}]   ;;  %s774_s4 = inlined_call_operand.hbm [shape: f32[32,128], index: 4, kind: input, shape index: {}]   ;;  %s775_s5 = inlined_call_operand.vmem [shape: f32[1,128], index: 5, kind: input, shape index: {}]   ;;  %s776_s6 = inlined_call_operand.hbm [shape: f32[8,128], index: 6, kind: output, shape index: {}]  }
   0x1   :  { %12 = vsyncpa [#allocation6], 0 }
   0x2   :  { %13 = vsyncpa [#allocation4], 0  ;;  %s627_s21 = smov [#allocation5]   ;;  %s628_s23 = smov [#allocation2]  }
   0x3   :  { %s33_s22 = sshll.u32 %s627_s21, 4  ;;  %s21_s24 = sshll.u32 %s628_s23, 4  ;;  %s34_s22 = int_to_ptr.vmem [resolvable:$true] %s33_s22  ;;  %s672_s24 = int_to_ptr.vmem [resolvable:$true] %s21_s24 }
   0x4   :  { %s533_s27 = scalar_lea.hbm %s772_s2, 512 }
   0x5   :  { %p534_p0 = scmp.ne.s32.totalorder %s772_s2, %s533_s27  ;;  %p537_p1 = scmp.lt.u32.totalorder %s533_s27, %s772_s2 }
   0x7   :  { %p539_p2 = pnand %p537_p1, %p534_p0 }
   0x9   :  { %542 = shalt.err (!%p539_p2)
}
   0xa   :  { %s543_s8 = scalar_lea.vmem %s34_s22, 512  ;;  %p548_p4 = scmp.lt.s32.totalorder %s34_s22, %s34_s22 }
   0xb   :  { %p544_p3 = scmp.ne.s32.totalorder %s34_s22, %s543_s8  ;;  %p549_p5 = scmp.lt.s32.totalorder %s543_s8, %s543_s8 }
   0xd   :  { %p550_p6 = por %p549_p5, %p548_p4 }
   0xf   :  { %p551_p7 = pnand %p550_p6, %p544_p3 }
  0x11   :  { %554 = shalt.err (!%p551_p7)
}
  0x12   :  { %s629_s9 = smov 128   ;;  %s630_s10 = smov 8  }
  0x13   :  { %39 = dma.hbm_to_vmem [thread:$0]  %s772_s2, 512, %s34_s22, [#allocation6], %s629_s9, %s629_s9, %s630_s10  }
  0x14   :  { %s555_s15 = scalar_lea.hbm %s771_s1, 1024 }
  0x15   :  { %p556_p8 = scmp.ne.s32.totalorder %s771_s1, %s555_s15  ;;  %p559_p9 = scmp.lt.u32.totalorder %s555_s15, %s771_s1 }
  0x17   :  { %p561_p10 = pnand %p559_p9, %p556_p8 }
  0x19   :  { %564 = shalt.err (!%p561_p10)
}
  0x1a   :  { %s565_s20 = scalar_lea.vmem %s672_s24, 1024  ;;  %p570_p12 = scmp.lt.s32.totalorder %s672_s24, %s672_s24 }
  0x1b   :  { %p566_p11 = scmp.ne.s32.totalorder %s672_s24, %s565_s20  ;;  %p571_p13 = scmp.lt.s32.totalorder %s565_s20, %s565_s20 }
  0x1d   :  { %p572_p0 = por %p571_p13, %p570_p12 }
  0x1f   :  { %p573_p1 = pnand %p572_p0, %p566_p11 }
  0x21   :  { %576 = shalt.err (!%p573_p1)
}
  0x22   :  { %27 = dma.hbm_to_vmem [thread:$0]  %s771_s1, 1024, %s672_s24, [#allocation3], %s629_s9, %s629_s9, %s630_s10  }
  0x23   :  { %s631_s22 = smov [#allocation7]   ;;  %s577_s27 = scalar_lea.hbm %s774_s4, 512 }
  0x24   :  { %s47_s23 = sshll.u32 %s631_s22, 4  ;;  %p578_p2 = scmp.ne.s32.totalorder %s774_s4, %s577_s27  ;;  %s48_s23 = int_to_ptr.vmem [resolvable:$true] %s47_s23 }
  0x25   :  { %p581_p3 = scmp.lt.u32.totalorder %s577_s27, %s774_s4 }
  0x27   :  { %p583_p4 = pnand %p581_p3, %p578_p2 }
  0x29   :  { %586 = shalt.err (!%p583_p4)
}
  0x2a   :  { %s587_s8 = scalar_lea.vmem %s48_s23, 512  ;;  %p592_p6 = scmp.lt.s32.totalorder %s48_s23, %s48_s23 }
  0x2b   :  { %p588_p5 = scmp.ne.s32.totalorder %s48_s23, %s587_s8  ;;  %p593_p7 = scmp.lt.s32.totalorder %s587_s8, %s587_s8 }
  0x2d   :  { %p594_p8 = por %p593_p7, %p592_p6 }
  0x2f   :  { %p595_p9 = pnand %p594_p8, %p588_p5 }
  0x31   :  { %598 = shalt.err (!%p595_p9)
}
  0x32   :  { %53 = dma.hbm_to_vmem [thread:$0]  %s774_s4, 512, %s48_s23, [#allocation6], %s629_s9, %s629_s9, %s630_s10  }
  0x33   :  { %621 = dma.done.wait [#allocation3], 1024  }
  0x34   :  { %622 = vsyncadd [#allocation3], 4294966272 }
  0x35   :  { %623 = dma.done.wait [#allocation6], 1024  }
  0x36   :  { %624 = vsyncadd [#allocation6], 4294966272  ;;  %v632_v0 = vmov 0   ;;  %v65_v1 = vld [vmem:[%s770_s0] sm:$0xff]  ;;  %v66_v5 = vlaneseq  ;;  %v633_v11 = vmov 0.0   ;;  %v242_v28 = vld [vmem:[#allocation5 + $0x8] sm:$0xff] }
  0x37   :  { %514 = vset.pattern.permute.xlu0 %v632_v0  ;;  %v74_v2 = vcvt.s32.f32 %v65_v1  ;;  %v241_v27 = vld [vmem:[#allocation5] sm:$0xff]  ;;  %v243_v29 = vld [vmem:[#allocation5 + $0x10] sm:$0xff]  ;;  %v634_v30 = vmov 0.0|0.0   ;;  %v244_v32 = vld [vmem:[#allocation5 + $0x18] sm:$0xff]  ;;  %vm635_vm1 = vmmov 0   ;;  %vm149_vm2 = vcmask 261120  }
  0x38   :  { %69 = vperm.xlu0 %514, %v65_v1   ;;  %v86_v6 = vshrl.u32 %v66_v5, 7  ;;  %v67_v7 = vand.u32 127, %v66_v5  ;;  %492 = vmatprep.subr.bf16.mxu0 %v634_v30  ;;  %v493_v31 = vpack.c.bf16 %v242_v28, %v241_v27  ;;  %v496_v33 = vpack.c.bf16 %v244_v32, %v243_v29  ;;  %v78_v35 = vld [vmem:[#allocation2 + $0x8] sm:$0xff]  ;;  %v77_v36 = vld [vmem:[#allocation2] sm:$0xff]  ;;  %v79_v41 = vld [vmem:[#allocation2 + $0x10] sm:$0xff]  ;;  %s636_s13 = smov [#allocation8]  }
  0x39   :  { %v75_v3 = vmax.f32 %v74_v2, 1.0  ;;  %478 = vmatprep.mubr.msk.f32.mxu0 %vm635_vm1, %v633_v11  ;;  %498 = vmatprep.subr.bf16.mxu1 %v634_v30  ;;  %v81_v42 = vld [vmem:[#allocation2 + $0x20] sm:$0xff]  ;;  %v80_v55 = vld [vmem:[#allocation2 + $0x18] sm:$0xff]  ;;  %v83_v56 = vld [vmem:[#allocation2 + $0x30] sm:$0xff]  ;;  %vm261_vm3 = vcmask 1041409   ;;  %vm264_vm4 = vcmask 1042434  }
  0x3a   :  { %v94_v8 = vsub.s32 1, %v86_v6  ;;  %v87_v9 = vsub.s32 0, %v86_v6  ;;  %v101_v15 = vsub.s32 2, %v86_v6  ;;  %v115_v16 = vsub.s32 4, %v86_v6  ;;  %489 = vmatprep.mubr.msk.f32.mxu1 %vm635_vm1, %v633_v11  ;;  %494 = vmatpush3.bf16.msra.mxu0 %v493_v31  ;;  %s445_s14 = sshll.u32 %s636_s13, 4  ;;  %s446_s14 = int_to_ptr.vmem [resolvable:$true] %s445_s14 }
  0x3b   :  { %v76_v4 = vmin.f32 %v75_v3, 8.0  ;;  %v108_v19 = vsub.s32 3, %v86_v6  ;;  %v129_v20 = vsub.s32 6, %v86_v6  ;;  %v122_v23 = vsub.s32 5, %v86_v6  ;;  %495 = vmatprep.subr.bf16.mxu0 %v634_v30  ;;  %s599_s15 = scalar_lea.vmem %s446_s14, 128  ;;  %p604_p11 = scmp.lt.s32.totalorder %s446_s14, %s446_s14 }
  0x3c   :  { %v136_v25 = vsub.s32 7, %v86_v6  ;;  %vm267_vm5 = vcmask 1043459   ;;  %vm270_vm6 = vcmask 1044484   ;;  %vm273_vm7 = vcmask 1045509   ;;  %p600_p10 = scmp.ne.s32.totalorder %s446_s14, %s599_s15  ;;  %p605_p12 = scmp.lt.s32.totalorder %s599_s15, %s599_s15 }
  0x3d   :  { %208 = vperm.xlu0 %514, %v76_v4   ;;  %vm276_vm8 = vcmask 1046534   ;;  %vm279_vm9 = vcmask 1047559  }
  0x3e   :  { %497 = vmatpush3.bf16.msra.mxu0 %v496_v33  ;;  %p606_p13 = por %p605_p12, %p604_p11 }
  0x40   :  { %p607_p0 = pnand %p606_p13, %p600_p10 }
  0xb7   :  { %v70_v10 = vpop.permute.xlu0 %69 }
  0xb8   :  { %vm71_vm0 = vcmp.lt.s32.totalorder %v67_v7, %v70_v10 }
  0xb9   :  { %v455_v12 = vsel %vm71_vm0, 1.0, %v633_v11 }
  0xba   :  { %v95_v13 = vrot.slane %v455_v12, %v94_v8  ;;  %v88_v14 = vrot.slane %v455_v12, %v87_v9  ;;  %v102_v17 = vrot.slane %v455_v12, %v101_v15  ;;  %v116_v18 = vrot.slane %v455_v12, %v115_v16  ;;  %v82_v8 = vld [vmem:[#allocation2 + $0x28] sm:$0xff] }
  0xbb   :  { %v109_v21 = vrot.slane %v455_v12, %v108_v19  ;;  %v130_v22 = vrot.slane %v455_v12, %v129_v20  ;;  %v123_v24 = vrot.slane %v455_v12, %v122_v23  ;;  %v137_v26 = vrot.slane %v455_v12, %v136_v25 }
  0xbc   :  { %97 = vbcast.lane.b32.xlu1 %v95_v13, 256  ;;  %90 = vbcast.lane.b32.xlu0 %v88_v14, 256  ;;  %v730_v34 = vpop.permute.xlu0 %208 }
  0xbd   :  { %v210_v43 = vrot.slane %v730_v34, 1  ;;  %v211_v50 = vrot.slane %v730_v34, 2  ;;  %v212_v1 = vrot.slane %v730_v34, 3  ;;  %v213_v4 = vrot.slane %v730_v34, 4 }
  0xbe   :  { %v214_v9 = vrot.slane %v730_v34, 5  ;;  %v215_v10 = vrot.slane %v730_v34, 6  ;;  %v216_v28 = vrot.slane %v730_v34, 7 }
  0xbf   :  { %515 = vrcp.f32 %v210_v43 }
  0xc0   :  { %104 = vbcast.lane.b32.xlu1 %v102_v17, 256  ;;  %118 = vbcast.lane.b32.xlu0 %v116_v18, 256  ;;  %517 = vrcp.f32 %v211_v50 }
  0xc1   :  { %519 = vrcp.f32 %v730_v34 }
  0xc2   :  { %521 = vrcp.f32 %v212_v1 }
  0xc3   :  { %523 = vrcp.f32 %v213_v4 }
  0xc4   :  { %111 = vbcast.lane.b32.xlu1 %v109_v21, 256  ;;  %132 = vbcast.lane.b32.xlu0 %v130_v22, 256  ;;  %525 = vrcp.f32 %v214_v9 }
  0xc5   :  { %527 = vrcp.f32 %v215_v10 }
  0xc6   :  { %529 = vrcp.f32 %v216_v28 }
  0xc8   :  { %125 = vbcast.lane.b32.xlu1 %v123_v24, 256  ;;  %v84_v24 = vld [vmem:[#allocation2 + $0x38] sm:$0xff] }
  0xc9   :  { %v516_v33 = vpop.eup %515 }
  0xcc   :  { %139 = vbcast.lane.b32.xlu1 %v137_v26, 256 }
 0x12e   :  { %v98_v37 = vpop.permute.xlu1 %97  ;;  %v91_v38 = vpop.permute.xlu0 %90 }
 0x12f   :  { %v142_v39 = vmul.f32 %v98_v37, %v78_v35  ;;  %v141_v40 = vmul.f32 %v91_v38, %v77_v36 }
 0x131   :  { %v157_v44 = vsel %vm149_vm2, %v142_v39, 0.0  ;;  %v150_v45 = vsel %vm149_vm2, %v141_v40, 0.0 }
 0x132   :  { %v158_v46 = vrot.slane %v157_v44, 4  ;;  %v151_v47 = vrot.slane %v150_v45, 4  ;;  %v105_v48 = vpop.permute.xlu1 %104  ;;  %v119_v49 = vpop.permute.xlu0 %118 }
 0x133   :  { %v143_v51 = vmul.f32 %v105_v48, %v79_v41  ;;  %v145_v52 = vmul.f32 %v119_v49, %v81_v42  ;;  %v518_v42 = vpop.eup %517 }
 0x134   :  { %v159_v53 = vadd.f32 %v158_v46, %v157_v44  ;;  %v152_v54 = vadd.f32 %v151_v47, %v150_v45 }
 0x135   :  { %v164_v57 = vsel %vm149_vm2, %v143_v51, 0.0  ;;  %v178_v58 = vsel %vm149_vm2, %v145_v52, 0.0 }
 0x136   :  { %v160_v59 = vrot.slane %v159_v53, 2  ;;  %v153_v60 = vrot.slane %v152_v54, 2  ;;  %v165_v61 = vrot.slane %v164_v57, 4  ;;  %v179_v62 = vrot.slane %v178_v58, 4  ;;  %v112_v63 = vpop.permute.xlu1 %111  ;;  %v133_v0 = vpop.permute.xlu0 %132 }
 0x137   :  { %v144_v2 = vmul.f32 %v112_v63, %v80_v55  ;;  %v147_v3 = vmul.f32 %v133_v0, %v83_v56 }
 0x138   :  { %v161_v5 = vadd.f32 %v160_v59, %v159_v53  ;;  %v166_v6 = vadd.f32 %v165_v61, %v164_v57  ;;  %v180_v7 = vadd.f32 %v179_v62, %v178_v58  ;;  %v154_v14 = vadd.f32 %v153_v60, %v152_v54  ;;  %v520_v54 = vpop.eup %519 }
 0x139   :  { %v171_v11 = vsel %vm149_vm2, %v144_v2, 0.0  ;;  %v192_v12 = vsel %vm149_vm2, %v147_v3, 0.0  ;;  %v522_v58 = vpop.eup %521 }
 0x13a   :  { %v162_v13 = vrot.slane %v161_v5, 1  ;;  %v167_v15 = vrot.slane %v166_v6, 2  ;;  %v181_v16 = vrot.slane %v180_v7, 2  ;;  %v126_v17 = vpop.permute.xlu1 %125  ;;  %v172_v18 = vrot.slane %v171_v11, 4  ;;  %v524_v61 = vpop.eup %523 }
 0x13b   :  { %v193_v19 = vrot.slane %v192_v12, 4  ;;  %v146_v20 = vmul.f32 %v126_v17, %v82_v8  ;;  %v155_v29 = vrot.slane %v154_v14, 1  ;;  %v526_v2 = vpop.eup %525 }
 0x13c   :  { %v163_v21 = vadd.f32 %v162_v13, %v161_v5  ;;  %v168_v22 = vadd.f32 %v167_v15, %v166_v6  ;;  %v182_v23 = vadd.f32 %v181_v16, %v180_v7  ;;  %v173_v25 = vadd.f32 %v172_v18, %v171_v11  ;;  %v528_v8 = vpop.eup %527 }
 0x13d   :  { %v194_v26 = vadd.f32 %v193_v19, %v192_v12  ;;  %v185_v27 = vsel %vm149_vm2, %v146_v20, 0.0  ;;  %v156_v48 = vadd.f32 %v155_v29, %v154_v14  ;;  %v530_v14 = vpop.eup %529  ;;  %v357_v29 = vld [vmem:[#allocation7 + $0x18] sm:$0xff] }
 0x13e   :  { %v169_v31 = vrot.slane %v168_v22, 1  ;;  %v140_v32 = vpop.permute.xlu1 %139  ;;  %v174_v35 = vrot.slane %v173_v25, 2  ;;  %v186_v37 = vrot.slane %v185_v27, 4  ;;  %v228_v39 = vmul.f32 %v516_v33, %v163_v21 }
 0x13f   :  { %v195_v36 = vrot.slane %v194_v26, 2  ;;  %v148_v38 = vmul.f32 %v140_v32, %v84_v24  ;;  %v183_v41 = vrot.slane %v182_v23, 1  ;;  %v226_v62 = vmul.f32 %v520_v54, %v156_v48  ;;  %v456_v32 = vld [vmem:[%s773_s3] ss:$0 sm:$0xff] }
 0x140   :  { %v170_v40 = vadd.f32 %v169_v31, %v168_v22  ;;  %v175_v43 = vadd.f32 %v174_v35, %v173_v25  ;;  %v187_v45 = vadd.f32 %v186_v37, %v185_v27  ;;  %v260_v55 = vrot.slane %v228_v39, 7  ;;  %v354_v25 = vld [vmem:[#allocation7] sm:$0xff]  ;;  %v356_v27 = vld [vmem:[#allocation7 + $0x10] sm:$0xff] }
 0x141   :  { %v196_v44 = vadd.f32 %v195_v36, %v194_v26  ;;  %v199_v46 = vsel %vm149_vm2, %v148_v38, 0.0  ;;  %v184_v52 = vadd.f32 %v183_v41, %v182_v23  ;;  %v355_v26 = vld [vmem:[#allocation7 + $0x8] sm:$0xff]  ;;  %v502_v31 = vpack.c.bf16 %v357_v29, %v356_v27  ;;  %v458_v38 = vld [vmem:[%s775_s5] ss:$0 sm:$0xff] }
 0x142   :  { %v230_v34 = vmul.f32 %v518_v42, %v170_v40  ;;  %v200_v47 = vrot.slane %v199_v46, 4  ;;  %v176_v49 = vrot.slane %v175_v43, 1  ;;  %v188_v51 = vrot.slane %v187_v45, 2 }
 0x143   :  { %v197_v50 = vrot.slane %v196_v44, 1  ;;  %v234_v3 = vmul.f32 %v524_v61, %v184_v52  ;;  %v262_v5 = vsel %vm261_vm3, %v260_v55, %v226_v62  ;;  %v499_v28 = vpack.c.bf16 %v355_v26, %v354_v25 }
 0x144   :  { %v201_v53 = vadd.f32 %v200_v47, %v199_v46  ;;  %v177_v56 = vadd.f32 %v176_v49, %v175_v43  ;;  %v189_v57 = vadd.f32 %v188_v51, %v187_v45  ;;  %v263_v59 = vrot.slane %v230_v34, 6 }
 0x145   :  { %v198_v0 = vadd.f32 %v197_v50, %v196_v44  ;;  %v269_v15 = vrot.slane %v234_v3, 4  ;;  %500 = vmatpush3.bf16.msra.mxu1 %v499_v28 }
 0x146   :  { %v202_v60 = vrot.slane %v201_v53, 2  ;;  %v232_v63 = vmul.f32 %v522_v58, %v177_v56  ;;  %v190_v1 = vrot.slane %v189_v57, 1  ;;  %v265_v9 = vsel %vm264_vm4, %v263_v59, %v262_v5  ;;  %501 = vmatprep.subr.bf16.mxu1 %v634_v30 }
 0x147   :  { %v238_v11 = vmul.f32 %v528_v8, %v198_v0 }
 0x148   :  { %v203_v4 = vadd.f32 %v202_v60, %v201_v53  ;;  %v266_v6 = vrot.slane %v232_v63, 5  ;;  %v191_v7 = vadd.f32 %v190_v1, %v189_v57 }
 0x149   :  { %v275_v20 = vrot.slane %v238_v11, 2  ;;  %503 = vmatpush3.bf16.msra.mxu1 %v502_v31 }
 0x14a   :  { %v204_v10 = vrot.slane %v203_v4, 1  ;;  %v236_v12 = vmul.f32 %v526_v2, %v191_v7  ;;  %v268_v13 = vsel %vm267_vm5, %v266_v6, %v265_v9 }
 0x14b   :  { %v271_v19 = vsel %vm270_vm6, %v269_v15, %v268_v13 }
 0x14c   :  { %v205_v16 = vadd.f32 %v204_v10, %v203_v4  ;;  %v272_v17 = vrot.slane %v236_v12, 3 }
 0x14e   :  { %v240_v18 = vmul.f32 %v530_v14, %v205_v16  ;;  %v274_v21 = vsel %vm273_vm7, %v272_v17, %v271_v19 }
 0x14f   :  { %v277_v23 = vsel %vm276_vm8, %v275_v20, %v274_v21 }
 0x150   :  { %v278_v22 = vrot.slane %v240_v18, 1 }
 0x152   :  { %v280_v24 = vsel %vm279_vm9, %v278_v22, %v277_v23 }
 0x153   :  { %479 = vmatmul.mubr.msk.f32.vlgmr.msra.gmra.mrb[0].mxu0 %vm149_vm2, %v280_v24 }
 0x226   :  { %v349_v33 = vpop.f32.mrb[0].mxu0 }
 0x227   :  { %v350_v35 = vadd.f32 %v456_v32, %v349_v33  ;;  %v480_v36 = vpop.f32.mrb[1].mxu0 }
 0x229   :  { %531 = vtanh.f32 %v350_v35 }
 0x233   :  { %v532_v37 = vpop.eup %531 }
 0x234   :  { %490 = vmatmul.mubr.msk.f32.vlgmr.msra.gmra.mrb[0].mxu1 %vm149_vm2, %v532_v37 }
 0x307   :  { %v434_v39 = vpop.f32.mrb[0].mxu1 }
 0x308   :  { %v435_v30 = vadd.f32 %v458_v38, %v434_v39  ;;  %v491_v40 = vpop.f32.mrb[1].mxu1 }
 0x30a   :  { %438 = vst [vmem:[#allocation8] sm:$0xff] %v435_v30 }
 0x30b   :  { %610 = shalt.err (!%p607_p0)
}
 0x30c   :  { %s611_s17 = scalar_lea.hbm %s776_s6, 128 }
 0x30d   :  { %p612_p1 = scmp.ne.s32.totalorder %s776_s6, %s611_s17  ;;  %p615_p2 = scmp.lt.u32.totalorder %s611_s17, %s776_s6 }
 0x30f   :  { %p617_p3 = pnand %p615_p2, %p612_p1 }
 0x311   :  { %620 = shalt.err (!%p617_p3)
}
 0x312   :  { %448 = dma.vmem_to_hbm [thread:$0]  %s446_s14, 128, %s776_s6, [#allocation4]  }
 0x313   :  { %625 = dma.done.wait [#allocation4], 128  }
 0x314   :  { %626 = vsyncadd [#allocation4], 4294967168 }
 0x315   :  { %452 = vsyncpa [#allocation3], 1 }
 0x316   :  { %453 = vsyncpa [#allocation6], 1 }
 0x317   :  { %454 = vsyncpa [#allocation4], 1 }

</bundles_post_ra>
